<compile_context>
chip_gen: v5e
topology: v5e:2x2
jax: 0.10.0
libtpu: 0.0.40
codegen_flags: <defaults>
</compile_context>

<pallas_src>
import math

import jax
import jax.numpy as jnp
from jax.experimental import pallas as pl
from jax.experimental.pallas import tpu as pltpu

LANE = 128  # TPU vreg lane width (fast axis)


def _sublane(dtype) -> int:
    # Sublane tile for the dtype: 8 rows for 32-bit, 16 for 16-bit, 32 for 8-bit.
    itemsize = jnp.dtype(dtype).itemsize
    return max(8, 32 // max(itemsize, 1))


def max_fusion_kernel(x_ref, o_ref):
    # x_ref: (N, rows_tile, 128); o_ref: (rows_tile, 128)
    # Elementwise max over the leading agent axis: N-1 VPU vmax ops per vreg,
    # lane-dense unmasked stores, zero cross-lane traffic.
    o_ref[...] = jnp.max(x_ref[...], axis=0)


def max_fusion(x, *, rows_per_tile=1024):
    """Pallas equivalent of MaxFusion.forward: max over dim 0.

    x: [N, ...] with any trailing feature shape; returns shape x.shape[1:].
    """
    N = x.shape[0]
    feat_shape = x.shape[1:]
    M = math.prod(feat_shape)

    if N == 1:
        # Degenerate case: max over a single agent is the identity.
        return x.reshape(feat_shape)

    dtype = x.dtype
    itemsize = jnp.dtype(dtype).itemsize
    sub = _sublane(dtype)

    # Total rows of the lane-dense (rows, 128) slab.
    rows = pl.cdiv(M, LANE)

    # Row tile: multiple of the dtype sublane tile, capped by rows_per_tile and
    # by a VMEM budget of ~24 MiB for the (N input + 1 output) double-buffered
    # working set (conservative for v7x's 32 MiB scoped default).
    vmem_budget = 24 * 1024 * 1024
    rt_vmem_cap = vmem_budget // (2 * (N + 1) * LANE * itemsize)
    rt = min(rows_per_tile, rows, rt_vmem_cap)
    rt = max(sub, (rt // sub) * sub)

    rows_pad = pl.cdiv(rows, rt) * rt
    total_pad = rows_pad * LANE

    # Single pad of the flattened features straight to the tiled extent.  The
    # pad value is irrelevant: each output column depends only on its own
    # input column and padded columns are sliced off afterwards.
    x2d = x.reshape(N, M)
    if total_pad != M:
        x2d = jnp.pad(x2d, ((0, 0), (0, total_pad - M)))
    x3d = x2d.reshape(N, rows_pad, LANE)

    out = pl.pallas_call(
        max_fusion_kernel,
        out_shape=jax.ShapeDtypeStruct((rows_pad, LANE), dtype),
        grid_spec=pltpu.PrefetchScalarGridSpec(
            num_scalar_prefetch=0,
            grid=(rows_pad // rt,),
            in_specs=[pl.BlockSpec((N, rt, LANE), lambda i: (0, i, 0))],
            out_specs=pl.BlockSpec((rt, LANE), lambda i: (i, 0)),
        ),
        compiler_params=pltpu.CompilerParams(
            dimension_semantics=("parallel",)),  # shards across TCs on v7x
    )(x3d)

    return out.reshape(total_pad)[:M].reshape(feat_shape)


if __name__ == "__main__":
    # x: [N_agents, C, H, W] — small shapes consistent with the fusion module.
    N, C, H, W = 2, 4, 16, 16
    key = jax.random.PRNGKey(0)
    x = jax.random.normal(key, (N, C, H, W), dtype=jnp.float32)

    out = max_fusion(x)
    out = jax.block_until_ready(out)

    # Pure-JAX reference check (exact: max is bit-exact).
    ref = jnp.max(x, axis=0)
    assert out.shape == (C, H, W)
    assert jnp.array_equal(out, ref)

    print("KERNEL_OK")
</pallas_src>

<mosaic_0001>
module attributes {stable_mosaic.version = 11 : i64} {
  func.func @max_fusion_kernel(%arg0: i32, %arg1: memref<2x8x128xf32, #tpu.memory_space<vmem>>, %arg2: memref<8x128xf32, #tpu.memory_space<vmem>>) attributes {dimension_semantics = [#tpu.dimension_semantics<parallel>], iteration_bounds = array<i64: 1>, scalar_prefetch = 0 : i64, scratch_operands = 0 : i64, tpu.core_type = #tpu.core_type<tc>, window_params = [{transform_indices = @transform_0, window_bounds = array<i64: 2, 8, 128>}, {transform_indices = @transform_1, window_bounds = array<i64: 8, 128>}]} {
    %c0 = arith.constant 0 : index
    %c0_0 = arith.constant 0 : index
    %c0_1 = arith.constant 0 : index
    %0 = vector.load %arg1[%c0, %c0_0, %c0_1] : memref<2x8x128xf32, #tpu.memory_space<vmem>>, vector<2x8x128xf32>
    %cst = arith.constant dense<0xFF800000> : vector<8x128xf32>
    %1 = vector.multi_reduction <maximumf>, %0, %cst [0] : vector<2x8x128xf32> to vector<8x128xf32>
    %c0_2 = arith.constant 0 : index
    %c0_3 = arith.constant 0 : index
    %2 = vector.load %arg2[%c0_2, %c0_3] : memref<8x128xf32, #tpu.memory_space<vmem>>, vector<8x128xf32>
    tpu.vector_store %arg2[%c0_2, %c0_3], %1 {strides = array<i32>} : memref<8x128xf32, #tpu.memory_space<vmem>>, vector<8x128xf32>,
    return
  }
  func.func @transform_0(%arg0: i32) -> (i32, i32, i32) {
    %c0_i32 = arith.constant 0 : i32
    %c0_i32_0 = arith.constant 0 : i32
    %c0_i32_1 = arith.constant 0 : i32
    return %c0_i32, %arg0, %c0_i32_0 : i32, i32, i32
  }
  func.func @transform_1(%arg0: i32) -> (i32, i32) {
    %c0_i32 = arith.constant 0 : i32
    %c0_i32_0 = arith.constant 0 : i32
    return %arg0, %c0_i32 : i32, i32
  }
}

</mosaic_0001>

<bundles_post_ra>
// kernel: tpu_custom_call.1
= control target key start
LH: loop header
LB: loop body
LE: loop exit
PB: predicated region body
PF: predicated region fallthrough
CT: control target
= control target key end

     0   :  { %6 = vsyncpa [#allocation3], 0  ;;  %s122_s0 = inlined_call_operand.hbm [shape: f32[2,8,128], index: 0, kind: input, shape index: {}]   ;;  %s123_s1 = inlined_call_operand.hbm [shape: f32[8,128], index: 1, kind: output, shape index: {}]  }
   0x1   :  { %7 = vsyncpa [#allocation4], 0  ;;  %s12_s8 = sshll.u32 %s122_s0, 4  ;;  %s102_s9 = smov [#allocation2]   ;;  %s13_s8 = int_to_ptr.hbm [resolvable:$true] %s12_s8 }
   0x2   :  { %s14_s10 = sshll.u32 %s102_s9, 4  ;;  %s103_s11 = smov 128   ;;  %s15_s10 = int_to_ptr.vmem [resolvable:$true] %s14_s10 }
   0x3   :  { %s104_s12 = smov 8  }
   0x4   :  { %20 = dma.hbm_to_vmem [thread:$0]  %s13_s8, 256, %s15_s10, [#allocation3], %s103_s11, %s103_s11, %s104_s12  }
   0x5   :  { %98 = dma.done.wait [#allocation3], 256  }
   0x6   :  { %99 = vsyncadd [#allocation3], 4294967040  ;;  %s105_s13 = smov [#allocation5]   ;;  %s36_s17 = sshll.u32 %s123_s1, 4  ;;  %v25_v0 = vld [vmem:[#allocation2] sm:$0xff]  ;;  %v26_v1 = vld [vmem:[#allocation2 + $0x8] sm:$0xff]  ;;  %s37_s17 = int_to_ptr.hbm [resolvable:$true] %s36_s17 }
   0x7   :  { %s34_s14 = sshll.u32 %s105_s13, 4  ;;  %v27_v2 = vmax.f32 %v25_v0, %v26_v1  ;;  %s35_s14 = int_to_ptr.vmem [resolvable:$true] %s34_s14 }
   0x9   :  { %28 = vst [vmem:[#allocation5] sm:$0xff] %v27_v2 }
   0xa   :  { %39 = dma.vmem_to_hbm [thread:$0]  %s35_s14, 128, %s37_s17, [#allocation4]  }
   0xb   :  { %100 = dma.done.wait [#allocation4], 128  }
   0xc   :  { %101 = vsyncadd [#allocation4], 4294967168 }
   0xd   :  { %44 = vsyncpa [#allocation3], 1 }
   0xe   :  { %45 = vsyncpa [#allocation4], 1 }

</bundles_post_ra>
